<compile_context>
chip_gen: v6e
topology: v6e:2x2x1
jax: 0.10.0
libtpu: 0.0.40
codegen_flags: <defaults>
</compile_context>

<pallas_src>
import functools
import math

import jax
import jax.numpy as jnp
from jax.experimental import pallas as pl
from jax.experimental.pallas import tpu as pltpu


# ---------------------------------------------------------------------------
# helpers
# ---------------------------------------------------------------------------

def _round_up(x, m):
    return ((x + m - 1) // m) * m


def _split_heads(x, num_heads):
    # (B, S, D) -> (B, H, S, D // H)
    b, s, d = x.shape
    return x.reshape(b, s, num_heads, d // num_heads).transpose(0, 2, 1, 3)


def _merge_heads(x):
    # (B, H, S, hd) -> (B, S, H * hd)
    b, h, s, hd = x.shape
    return x.transpose(0, 2, 1, 3).reshape(b, s, h * hd)


# ---------------------------------------------------------------------------
# Pallas kernels
# ---------------------------------------------------------------------------

def _linear_kernel(x_ref, w_ref, b_ref, o_ref, *, apply_relu):
    # x_ref: (TM, Din)  w_ref: (Din, Dout)  b_ref: (1, Dout)  o_ref: (TM, Dout)
    x = x_ref[...].astype(jnp.float32)
    w = w_ref[...].astype(jnp.float32)
    acc = jnp.dot(x, w, preferred_element_type=jnp.float32)       # MXU, f32 acc
    acc = acc + b_ref[...].astype(jnp.float32)
    if apply_relu:
        acc = jnp.maximum(acc, 0.0)
    o_ref[...] = acc.astype(o_ref.dtype)                          # lane-dense store


def pallas_linear(x2d, w, b, *, apply_relu=False, max_tile_rows=2048):
    """y = x2d @ w + b (optional ReLU).  x2d: (rows, Din), w: (Din, Dout), b: (Dout,)."""
    rows, din = x2d.shape
    dout = w.shape[1]
    # Large row tiles (perf feedback): a (2048, 128) f32 tile is 1 MiB, trivially
    # inside VMEM even double-buffered; pad rows instead of asserting divisibility.
    tm = min(max_tile_rows, _round_up(rows, 8))
    padded = _round_up(rows, tm)
    if padded != rows:
        x2d = jnp.pad(x2d, ((0, padded - rows), (0, 0)))
    out = pl.pallas_call(
        functools.partial(_linear_kernel, apply_relu=apply_relu),
        out_shape=jax.ShapeDtypeStruct((padded, dout), x2d.dtype),
        grid_spec=pltpu.PrefetchScalarGridSpec(
            num_scalar_prefetch=0,
            grid=(padded // tm,),
            in_specs=[
                pl.BlockSpec((tm, din), lambda i: (i, 0)),        # activations
                pl.BlockSpec((din, dout), lambda i: (0, 0)),      # weight (resident)
                pl.BlockSpec((1, dout), lambda i: (0, 0)),        # bias (resident)
            ],
            out_specs=pl.BlockSpec((tm, dout), lambda i: (i, 0)),
        ),
        compiler_params=pltpu.CompilerParams(
            dimension_semantics=("parallel",),    # shards row tiles across TCs (v7x)
        ),
    )(x2d, w, b.reshape(1, dout))
    return out[:rows]


def _add_ln_kernel(x_ref, r_ref, g_ref, b_ref, o_ref, *, eps):
    # Fused residual add + LayerNorm over the last (lane) dim.
    s = x_ref[...].astype(jnp.float32) + r_ref[...].astype(jnp.float32)
    mean = jnp.mean(s, axis=-1, keepdims=True)
    c = s - mean
    var = jnp.mean(c * c, axis=-1, keepdims=True)
    y = c * jax.lax.rsqrt(var + eps)
    y = y * g_ref[...].astype(jnp.float32) + b_ref[...].astype(jnp.float32)
    o_ref[...] = y.astype(o_ref.dtype)


def pallas_add_layernorm(x, res, gamma, beta, *, eps=1e-5, max_tile_rows=2048):
    """LayerNorm(x + res) over the last dim.  x, res: (B, S, D)."""
    bsz, seq, d = x.shape
    rows = bsz * seq
    x2d = x.reshape(rows, d)
    r2d = res.reshape(rows, d)
    tm = min(max_tile_rows, _round_up(rows, 8))
    padded = _round_up(rows, tm)
    if padded != rows:
        x2d = jnp.pad(x2d, ((0, padded - rows), (0, 0)))
        r2d = jnp.pad(r2d, ((0, padded - rows), (0, 0)))
    out = pl.pallas_call(
        functools.partial(_add_ln_kernel, eps=eps),
        out_shape=jax.ShapeDtypeStruct((padded, d), x.dtype),
        grid_spec=pltpu.PrefetchScalarGridSpec(
            num_scalar_prefetch=0,
            grid=(padded // tm,),
            in_specs=[
                pl.BlockSpec((tm, d), lambda i: (i, 0)),
                pl.BlockSpec((tm, d), lambda i: (i, 0)),
                pl.BlockSpec((1, d), lambda i: (0, 0)),
                pl.BlockSpec((1, d), lambda i: (0, 0)),
            ],
            out_specs=pl.BlockSpec((tm, d), lambda i: (i, 0)),
        ),
        compiler_params=pltpu.CompilerParams(
            dimension_semantics=("parallel",),
        ),
    )(x2d, r2d, gamma.reshape(1, d), beta.reshape(1, d))
    return out[:rows].reshape(bsz, seq, d)


def _attn_core_kernel(q_ref, k_ref, v_ref, o_ref, *, scale, causal):
    # refs: (1, H, S, hd) — one batch element, all heads at once.
    q = q_ref[0].astype(jnp.float32)                          # (H, S, hd)
    k = k_ref[0].astype(jnp.float32)
    v = v_ref[0].astype(jnp.float32)
    s = jnp.einsum("hqd,hkd->hqk", q, k,
                   preferred_element_type=jnp.float32) * scale      # (H, S, S)
    if causal:
        row = jax.lax.broadcasted_iota(jnp.int32, s.shape, 1)
        col = jax.lax.broadcasted_iota(jnp.int32, s.shape, 2)
        s = jnp.where(col > row, jnp.float32(-1e9), s)
    m = jnp.max(s, axis=-1, keepdims=True)
    e = jnp.exp(s - m)
    p = e / jnp.sum(e, axis=-1, keepdims=True)
    ctx = jnp.einsum("hqk,hkd->hqd", p, v,
                     preferred_element_type=jnp.float32)             # (H, S, hd)
    o_ref[0] = ctx.astype(o_ref.dtype)


def pallas_attention_core(q, k, v, *, causal):
    """Scaled dot-product attention core.  q, k, v: (B, H, S, hd)."""
    bsz, h, s, hd = q.shape
    spec = pl.BlockSpec((1, h, s, hd), lambda b: (b, 0, 0, 0))
    return pl.pallas_call(
        functools.partial(_attn_core_kernel, scale=1.0 / math.sqrt(hd), causal=causal),
        out_shape=jax.ShapeDtypeStruct((bsz, h, s, hd), q.dtype),
        grid_spec=pltpu.PrefetchScalarGridSpec(
            num_scalar_prefetch=0,
            grid=(bsz,),
            in_specs=[spec, spec, spec],
            out_specs=spec,
        ),
        compiler_params=pltpu.CompilerParams(
            dimension_semantics=("parallel",),
        ),
    )(q, k, v)


# ---------------------------------------------------------------------------
# Module forward built from the Pallas kernels
# ---------------------------------------------------------------------------

def pallas_mha(q_src, kv_src, p, *, num_heads, causal):
    """Multi-head attention: Q from q_src, K/V from kv_src."""
    bsz, seq, d = q_src.shape
    rows = bsz * seq
    # Fused K/V projection: one lane-dense (rows, 2D) matmul instead of two calls.
    w_kv = jnp.concatenate([p["wk"], p["wv"]], axis=1)        # (D, 2D)
    b_kv = jnp.concatenate([p["bk"], p["bv"]], axis=0)        # (2D,)
    q = pallas_linear(q_src.reshape(rows, d), p["wq"], p["bq"])
    kv = pallas_linear(kv_src.reshape(rows, d), w_kv, b_kv)
    k, v = kv[:, :d], kv[:, d:]
    qh = _split_heads(q.reshape(bsz, seq, d), num_heads)
    kh = _split_heads(k.reshape(bsz, seq, d), num_heads)
    vh = _split_heads(v.reshape(bsz, seq, d), num_heads)
    ctx = _merge_heads(pallas_attention_core(qh, kh, vh, causal=causal))
    out = pallas_linear(ctx.reshape(rows, d), p["wo"], p["bo"])
    return out.reshape(bsz, seq, d)


def pallas_decoder_layer(x, post_skill, p, *, num_heads, causal):
    bsz, seq, d = x.shape
    rows = bsz * seq
    att1 = pallas_mha(x, x, p["att1"], num_heads=num_heads, causal=causal)
    out1 = pallas_add_layernorm(x, att1, p["ln1_g"], p["ln1_b"])
    att2 = pallas_mha(post_skill, out1, p["att2"], num_heads=num_heads, causal=causal)
    out2 = pallas_add_layernorm(out1, att2, p["ln2_g"], p["ln2_b"])
    h = pallas_linear(out2.reshape(rows, d), p["ffn_w1"], p["ffn_b1"], apply_relu=True)
    f = pallas_linear(h, p["ffn_w2"], p["ffn_b2"]).reshape(bsz, seq, d)
    # TODO(synk): nn.Dropout(0.2) inside FFN / attention is an inference-mode identity here.
    return pallas_add_layernorm(out2, f, p["ln3_g"], p["ln3_b"])


def bertkt_forward(params, item, pt, ft, *, num_heads):
    """Pallas forward of BertKTTestPermutation (return_attn=False)."""
    if pt == 1 and ft == 0:
        masked_skill, prior_skill, prior_rsps = item[0], item[2], item[3]
        combo = (jnp.take(params["emb_prior_skill"], prior_skill, axis=0)
                 + jnp.take(params["emb_prior_rsps"], prior_rsps, axis=0)
                 + jnp.take(params["emb_post_skill"], masked_skill, axis=0))
        for layer_p in params["layers"]:
            combo = pallas_decoder_layer(combo, combo, layer_p,
                                         num_heads=num_heads, causal=False)
        return combo
    if pt == 0 and ft == 1:
        prior_skill, prior_rsps, post_skill = item[0], item[1], item[2]
        combo = (jnp.take(params["emb_prior_skill"], prior_skill, axis=0)
                 + jnp.take(params["emb_prior_rsps"], prior_rsps, axis=0)
                 + jnp.take(params["emb_post_skill"], post_skill, axis=0))
        # The reference code `break`s after the first decoder layer in this branch.
        return pallas_decoder_layer(combo, combo, params["layers"][0],
                                    num_heads=num_heads, causal=True)
    raise ValueError("unsupported (pt, ft) combination")


# ---------------------------------------------------------------------------
# Pure-JAX reference (for correctness check)
# ---------------------------------------------------------------------------

_HI = jax.lax.Precision.HIGHEST


def _ref_linear(x, w, b):
    return jnp.dot(x, w, precision=_HI) + b


def _ref_mha(q_src, kv_src, p, *, num_heads, causal):
    bsz, seq, d = q_src.shape
    hd = d // num_heads
    qh = _split_heads(_ref_linear(q_src, p["wq"], p["bq"]), num_heads)
    kh = _split_heads(_ref_linear(kv_src, p["wk"], p["bk"]), num_heads)
    vh = _split_heads(_ref_linear(kv_src, p["wv"], p["bv"]), num_heads)
    s = jnp.einsum("bhqd,bhkd->bhqk", qh, kh, precision=_HI) / math.sqrt(hd)
    if causal:
        mask = jnp.triu(jnp.ones((seq, seq), dtype=bool), k=1)
        s = jnp.where(mask, -1e9, s)
    w = jax.nn.softmax(s, axis=-1)
    ctx = _merge_heads(jnp.einsum("bhqk,bhkd->bhqd", w, vh, precision=_HI))
    return _ref_linear(ctx, p["wo"], p["bo"])


def _ref_layernorm(x, g, b, eps=1e-5):
    m = jnp.mean(x, axis=-1, keepdims=True)
    v = jnp.mean((x - m) ** 2, axis=-1, keepdims=True)
    return (x - m) * jax.lax.rsqrt(v + eps) * g + b


def _ref_decoder_layer(x, post_skill, p, *, num_heads, causal):
    att1 = _ref_mha(x, x, p["att1"], num_heads=num_heads, causal=causal)
    out1 = _ref_layernorm(x + att1, p["ln1_g"], p["ln1_b"])
    att2 = _ref_mha(post_skill, out1, p["att2"], num_heads=num_heads, causal=causal)
    out2 = _ref_layernorm(out1 + att2, p["ln2_g"], p["ln2_b"])
    h = jnp.maximum(_ref_linear(out2, p["ffn_w1"], p["ffn_b1"]), 0.0)
    f = _ref_linear(h, p["ffn_w2"], p["ffn_b2"])
    return _ref_layernorm(out2 + f, p["ln3_g"], p["ln3_b"])


def _ref_forward(params, item, pt, ft, *, num_heads):
    if pt == 1 and ft == 0:
        masked_skill, prior_skill, prior_rsps = item[0], item[2], item[3]
        combo = (params["emb_prior_skill"][prior_skill]
                 + params["emb_prior_rsps"][prior_rsps]
                 + params["emb_post_skill"][masked_skill])
        for layer_p in params["layers"]:
            combo = _ref_decoder_layer(combo, combo, layer_p,
                                       num_heads=num_heads, causal=False)
        return combo
    prior_skill, prior_rsps, post_skill = item[0], item[1], item[2]
    combo = (params["emb_prior_skill"][prior_skill]
             + params["emb_prior_rsps"][prior_rsps]
             + params["emb_post_skill"][post_skill])
    return _ref_decoder_layer(combo, combo, params["layers"][0],
                              num_heads=num_heads, causal=True)


# ---------------------------------------------------------------------------
# Deterministic parameter construction (PyTorch-style inits)
# ---------------------------------------------------------------------------

def _init_linear_params(key, din, dout):
    kw, kb = jax.random.split(key)
    bound = 1.0 / math.sqrt(din)
    w = jax.random.uniform(kw, (din, dout), jnp.float32, -bound, bound)
    b = jax.random.uniform(kb, (dout,), jnp.float32, -bound, bound)
    return w, b


def _init_mha_params(key, d):
    ks = jax.random.split(key, 4)
    wq, bq = _init_linear_params(ks[0], d, d)
    wk, bk = _init_linear_params(ks[1], d, d)
    wv, bv = _init_linear_params(ks[2], d, d)
    wo, bo = _init_linear_params(ks[3], d, d)
    return dict(wq=wq, bq=bq, wk=wk, bk=bk, wv=wv, bv=bv, wo=wo, bo=bo)


def _init_layer_params(key, d):
    ks = jax.random.split(key, 7)

    def ln(k):
        kg, kb = jax.random.split(k)
        return (1.0 + 0.1 * jax.random.normal(kg, (d,), jnp.float32),
                0.1 * jax.random.normal(kb, (d,), jnp.float32))

    ffn_w1, ffn_b1 = _init_linear_params(ks[2], d, d)
    ffn_w2, ffn_b2 = _init_linear_params(ks[3], d, d)
    g1, b1 = ln(ks[4]); g2, b2 = ln(ks[5]); g3, b3 = ln(ks[6])
    return dict(att1=_init_mha_params(ks[0], d), att2=_init_mha_params(ks[1], d),
                ffn_w1=ffn_w1, ffn_b1=ffn_b1, ffn_w2=ffn_w2, ffn_b2=ffn_b2,
                ln1_g=g1, ln1_b=b1, ln2_g=g2, ln2_b=b2, ln3_g=g3, ln3_b=b3)


def init_bertkt_params(key, *, num_layers, n_skill, d_model):
    ks = jax.random.split(key, num_layers + 3)
    return dict(
        emb_prior_rsps=jax.random.normal(ks[0], (2, d_model), jnp.float32),
        emb_prior_skill=jax.random.normal(ks[1], (n_skill + 2, d_model), jnp.float32),
        emb_post_skill=jax.random.normal(ks[2], (n_skill + 2, d_model), jnp.float32),
        layers=[_init_layer_params(ks[3 + i], d_model) for i in range(num_layers)],
    )


# ---------------------------------------------------------------------------
# demo / self-check
# ---------------------------------------------------------------------------

if __name__ == "__main__":
    num_layers, num_heads = 2, 8
    n_skill, d_model = 16, 128
    B, S = 2, 8

    key = jax.random.PRNGKey(0)
    k_params, k_sk, k_rsps, k_post, k_mask = jax.random.split(key, 5)
    params = init_bertkt_params(k_params, num_layers=num_layers,
                                n_skill=n_skill, d_model=d_model)

    prior_skill = jax.random.randint(k_sk, (B, S), 0, n_skill + 2)
    prior_rsps = jax.random.randint(k_rsps, (B, S), 0, 2)
    post_skill = jax.random.randint(k_post, (B, S), 0, n_skill + 2)
    masked_skill = jax.random.randint(k_mask, (B, S), 0, n_skill + 2)

    # Fine-tune path: pt=0, ft=1 (causal look-ahead mask, single layer due to `break`).
    item_ft = (prior_skill, prior_rsps, post_skill)
    out_ft = jax.block_until_ready(
        bertkt_forward(params, item_ft, pt=0, ft=1, num_heads=num_heads))
    ref_ft = _ref_forward(params, item_ft, pt=0, ft=1, num_heads=num_heads)
    assert out_ft.shape == (B, S, d_model)
    assert jnp.allclose(out_ft, ref_ft, atol=5e-3, rtol=5e-3), \
        float(jnp.max(jnp.abs(out_ft - ref_ft)))

    # Pre-train path: pt=1, ft=0 (no mask, all decoder layers).
    item_pt = (masked_skill, None, prior_skill, prior_rsps)
    out_pt = jax.block_until_ready(
        bertkt_forward(params, item_pt, pt=1, ft=0, num_heads=num_heads))
    ref_pt = _ref_forward(params, item_pt, pt=1, ft=0, num_heads=num_heads)
    assert out_pt.shape == (B, S, d_model)
    assert jnp.allclose(out_pt, ref_pt, atol=5e-3, rtol=5e-3), \
        float(jnp.max(jnp.abs(out_pt - ref_pt)))

    print("KERNEL_OK")
</pallas_src>

<mosaic_0001>
module attributes {stable_mosaic.version = 11 : i64} {
  func.func @_linear_kernel(%arg0: i32, %arg1: memref<16x128xf32, #tpu.memory_space<vmem>>, %arg2: memref<128x128xf32, #tpu.memory_space<vmem>>, %arg3: memref<1x128xf32, #tpu.memory_space<vmem>>, %arg4: memref<16x128xf32, #tpu.memory_space<vmem>>) attributes {dimension_semantics = [#tpu.dimension_semantics<parallel>], iteration_bounds = array<i64: 1>, scalar_prefetch = 0 : i64, scratch_operands = 0 : i64, tpu.core_type = #tpu.core_type<tc>, window_params = [{transform_indices = @transform_0, window_bounds = array<i64: 16, 128>}, {pipeline_mode = #tpu.pipeline_mode<synchronous>, transform_indices = @transform_1, window_bounds = array<i64: 128, 128>}, {pipeline_mode = #tpu.pipeline_mode<synchronous>, transform_indices = @transform_2, window_bounds = array<i64: 1, 128>}, {transform_indices = @transform_3, window_bounds = array<i64: 16, 128>}]} {
    %c0 = arith.constant 0 : index
    %c0_0 = arith.constant 0 : index
    %0 = vector.load %arg1[%c0, %c0_0] : memref<16x128xf32, #tpu.memory_space<vmem>>, vector<16x128xf32>
    %c0_1 = arith.constant 0 : index
    %c0_2 = arith.constant 0 : index
    %1 = vector.load %arg2[%c0_1, %c0_2] : memref<128x128xf32, #tpu.memory_space<vmem>>, vector<128x128xf32>
    %cst = arith.constant dense<0.000000e+00> : vector<16x128xf32>
    %2 = tpu.matmul %0, %1, %cst {dimension_numbers = #tpu.dot_dimension_numbers<[1], [0], [0], [1], [0, 0, 1, 1], [], []>} : vector<16x128xf32>, vector<128x128xf32>, vector<16x128xf32> -> vector<16x128xf32>
    %c0_3 = arith.constant 0 : index
    %c0_4 = arith.constant 0 : index
    %3 = vector.load %arg3[%c0_3, %c0_4] : memref<1x128xf32, #tpu.memory_space<vmem>>, vector<1x128xf32>
    %4 = vector.broadcast %3 : vector<1x128xf32> to vector<16x128xf32>
    %5 = arith.addf %2, %4 : vector<16x128xf32>
    %c0_5 = arith.constant 0 : index
    %c0_6 = arith.constant 0 : index
    %6 = vector.load %arg4[%c0_5, %c0_6] : memref<16x128xf32, #tpu.memory_space<vmem>>, vector<16x128xf32>
    tpu.vector_store %arg4[%c0_5, %c0_6], %5 {strides = array<i32>} : memref<16x128xf32, #tpu.memory_space<vmem>>, vector<16x128xf32>,
    return
  }
  func.func @transform_0(%arg0: i32) -> (i32, i32) {
    %c0_i32 = arith.constant 0 : i32
    %c0_i32_0 = arith.constant 0 : i32
    return %arg0, %c0_i32 : i32, i32
  }
  func.func @transform_1(%arg0: i32) -> (i32, i32) {
    %c0_i32 = arith.constant 0 : i32
    %c0_i32_0 = arith.constant 0 : i32
    %c0_i32_1 = arith.constant 0 : i32
    return %c0_i32, %c0_i32_0 : i32, i32
  }
  func.func @transform_2(%arg0: i32) -> (i32, i32) {
    %c0_i32 = arith.constant 0 : i32
    %c0_i32_0 = arith.constant 0 : i32
    %c0_i32_1 = arith.constant 0 : i32
    return %c0_i32, %c0_i32_0 : i32, i32
  }
  func.func @transform_3(%arg0: i32) -> (i32, i32) {
    %c0_i32 = arith.constant 0 : i32
    %c0_i32_0 = arith.constant 0 : i32
    return %arg0, %c0_i32 : i32, i32
  }
}

</mosaic_0001>

<bundles_post_ra>
// kernel: tpu_custom_call.1
= control target key start
LH: loop header
LB: loop body
LE: loop exit
PB: predicated region body
PF: predicated region fallthrough
CT: control target
= control target key end

     0   :  { %8 = vsyncpa [#allocation3], 0  ;;  %s334_s0 = inlined_call_operand.hbm [shape: f32[16,128], index: 0, kind: input, shape index: {}]   ;;  %s335_s1 = inlined_call_operand.hbm [shape: f32[128,128], index: 1, kind: input, shape index: {}]   ;;  %s336_s2 = inlined_call_operand.vmem [shape: f32[1,128], index: 2, kind: input, shape index: {}]   ;;  %s337_s3 = inlined_call_operand.hbm [shape: f32[16,128], index: 3, kind: output, shape index: {}]  }
   0x1   :  { %9 = vsyncpa [#allocation6], 0 }
   0x2   :  { %10 = vsyncpa [#allocation4], 0  ;;  %s288_s12 = smov [#allocation2]  }
   0x3   :  { %s16_s13 = sshll.u32 %s288_s12, 4  ;;  %s17_s13 = int_to_ptr.vmem [resolvable:$true] %s16_s13 }
   0x4   :  { %s230_s14 = scalar_lea.vmem %s17_s13, 256  ;;  %p235_p1 = scmp.lt.s32.totalorder %s17_s13, %s17_s13 }
   0x5   :  { %p231_p0 = scmp.ne.s32.totalorder %s17_s13, %s230_s14  ;;  %p236_p2 = scmp.lt.s32.totalorder %s230_s14, %s230_s14 }
   0x7   :  { %p237_p3 = por %p236_p2, %p235_p1 }
   0x9   :  { %p238_p4 = pnand %p237_p3, %p231_p0 }
   0xb   :  { %241 = shalt.err (!%p238_p4)
}
   0xc   :  { %s289_s15 = smov 128   ;;  %s290_s16 = smov 8  }
   0xd   :  { %22 = dma.hbm_to_vmem [thread:$0]  %s334_s0, 256, %s17_s13, [#allocation3], %s289_s15, %s289_s15, %s290_s16  }
   0xe   :  { %s291_s19 = smov [#allocation5]  }
   0xf   :  { %s28_s20 = sshll.u32 %s291_s19, 4  ;;  %s29_s20 = int_to_ptr.vmem [resolvable:$true] %s28_s20 }
  0x10   :  { %s250_s21 = scalar_lea.vmem %s29_s20, 2048  ;;  %p255_p6 = scmp.lt.s32.totalorder %s29_s20, %s29_s20 }
  0x11   :  { %p251_p5 = scmp.ne.s32.totalorder %s29_s20, %s250_s21  ;;  %p256_p7 = scmp.lt.s32.totalorder %s250_s21, %s250_s21 }
  0x13   :  { %p257_p8 = por %p256_p7, %p255_p6 }
  0x15   :  { %p258_p9 = pnand %p257_p8, %p251_p5 }
  0x17   :  { %261 = shalt.err (!%p258_p9)
}
  0x18   :  { %34 = dma.hbm_to_vmem [thread:$0]  %s335_s1, 2048, %s29_s20, [#allocation6], %s289_s15, %s289_s15, %s290_s16  }
  0x19   :  { %282 = dma.done.wait [#allocation3], 256  }
  0x1a   :  { %283 = vsyncadd [#allocation3], 4294967040 }
  0x1b   :  { %284 = dma.done.wait [#allocation6], 2048  }
  0x1c   :  { %285 = vsyncadd [#allocation6], 4294965248  ;;  %v60_v0 = vld [vmem:[#allocation5 + $0x78] sm:$0xff]  ;;  %v59_v1 = vld [vmem:[#allocation5 + $0x70] sm:$0xff]  ;;  %s292_s24 = smov [#allocation7]  }
  0x1d   :  { %182 = vmatprep.subr.mxu0 %v60_v0  ;;  %v58_v2 = vld [vmem:[#allocation5 + $0x68] sm:$0xff]  ;;  %v57_v3 = vld [vmem:[#allocation5 + $0x60] sm:$0xff]  ;;  %v43_v4 = vld [vmem:[#allocation2] sm:$0xff]  ;;  %s150_s25 = sshll.u32 %s292_s24, 4  ;;  %s151_s25 = int_to_ptr.vmem [resolvable:$true] %s150_s25 }
  0x1e   :  { %183 = vmatpush3.msra.mxu0 %v60_v0  ;;  %v56_v5 = vld [vmem:[#allocation5 + $0x58] sm:$0xff]  ;;  %214 = vmatprep.mubr.f32.mxu0 %v43_v4  ;;  %v55_v6 = vld [vmem:[#allocation5 + $0x50] sm:$0xff]  ;;  %v54_v7 = vld [vmem:[#allocation5 + $0x48] sm:$0xff]  ;;  %s262_s26 = scalar_lea.vmem %s151_s25, 256  ;;  %p267_p11 = scmp.lt.s32.totalorder %s151_s25, %s151_s25 }
  0x1f   :  { %184 = vmatprep.subr.mxu0 %v59_v1  ;;  %v53_v8 = vld [vmem:[#allocation5 + $0x40] sm:$0xff]  ;;  %v52_v9 = vld [vmem:[#allocation5 + $0x38] sm:$0xff]  ;;  %v51_v10 = vld [vmem:[#allocation5 + $0x30] sm:$0xff]  ;;  %p263_p10 = scmp.ne.s32.totalorder %s151_s25, %s262_s26  ;;  %p268_p12 = scmp.lt.s32.totalorder %s262_s26, %s262_s26 }
  0x20   :  { %185 = vmatpush3.msra.mxu0 %v59_v1  ;;  %v50_v11 = vld [vmem:[#allocation5 + $0x28] sm:$0xff]  ;;  %v49_v12 = vld [vmem:[#allocation5 + $0x20] sm:$0xff]  ;;  %v48_v13 = vld [vmem:[#allocation5 + $0x18] sm:$0xff] }
  0x21   :  { %186 = vmatprep.subr.mxu0 %v58_v2  ;;  %v47_v14 = vld [vmem:[#allocation5 + $0x10] sm:$0xff]  ;;  %v46_v15 = vld [vmem:[#allocation5 + $0x8] sm:$0xff]  ;;  %v45_v16 = vld [vmem:[#allocation5] sm:$0xff]  ;;  %p269_p13 = por %p268_p12, %p267_p11 }
  0x22   :  { %187 = vmatpush3.msra.mxu0 %v58_v2  ;;  %v44_v17 = vld [vmem:[#allocation2 + $0x8] sm:$0xff]  ;;  %v163_v18 = vld [vmem:[%s336_s2] ss:$0 sm:$0xff] }
  0x23   :  { %188 = vmatprep.subr.mxu0 %v57_v3  ;;  %p270_p0 = pnand %p269_p13, %p263_p10 }
  0x24   :  { %189 = vmatpush3.msra.mxu0 %v57_v3 }
  0x25   :  { %190 = vmatprep.subr.mxu0 %v56_v5 }
  0x26   :  { %191 = vmatpush3.msra.mxu0 %v56_v5 }
  0x27   :  { %192 = vmatprep.subr.mxu0 %v55_v6 }
  0x28   :  { %193 = vmatpush3.msra.mxu0 %v55_v6 }
  0x29   :  { %194 = vmatprep.subr.mxu0 %v54_v7 }
  0x2a   :  { %195 = vmatpush3.msra.mxu0 %v54_v7 }
  0x2b   :  { %196 = vmatprep.subr.mxu0 %v53_v8 }
  0x2c   :  { %197 = vmatpush3.msra.mxu0 %v53_v8 }
  0x2d   :  { %198 = vmatprep.subr.mxu0 %v52_v9 }
  0x2e   :  { %199 = vmatpush3.msra.mxu0 %v52_v9 }
  0x2f   :  { %200 = vmatprep.subr.mxu0 %v51_v10 }
  0x30   :  { %201 = vmatpush3.msra.mxu0 %v51_v10 }
  0x31   :  { %202 = vmatprep.subr.mxu0 %v50_v11 }
  0x32   :  { %203 = vmatpush3.msra.mxu0 %v50_v11 }
  0x33   :  { %204 = vmatprep.subr.mxu0 %v49_v12 }
  0x34   :  { %205 = vmatpush3.msra.mxu0 %v49_v12 }
  0x35   :  { %206 = vmatprep.subr.mxu0 %v48_v13 }
  0x36   :  { %207 = vmatpush3.msra.mxu0 %v48_v13 }
  0x37   :  { %208 = vmatprep.subr.mxu0 %v47_v14 }
  0x38   :  { %209 = vmatpush3.msra.mxu0 %v47_v14 }
  0x39   :  { %210 = vmatprep.subr.mxu0 %v46_v15 }
  0x3a   :  { %211 = vmatpush3.msra.mxu0 %v46_v15 }
  0x3b   :  { %212 = vmatprep.subr.mxu0 %v45_v16 }
  0x3c   :  { %213 = vmatpush3.msra.mxu0 %v45_v16 }
  0x3d   :  { %215 = vmatmul.mubr.f32.vlgmr.msra.gmra.mxu0 %v44_v17 }
  0xfd   :  { %v216_v19 = vpop.f32.mrf.mxu0 }
  0xfe   :  { %v140_v20 = vadd.f32 %v216_v19, %v163_v18 }
  0xff   :  { %v134_v21 = vpop.f32.mrf.mxu0 }
 0x100   :  { %144 = vst [vmem:[#allocation7 + $0x8] sm:$0xff] %v140_v20  ;;  %v135_v22 = vadd.f32 %v163_v18, %v134_v21 }
 0x102   :  { %143 = vst [vmem:[#allocation7] sm:$0xff] %v135_v22 }
 0x103   :  { %273 = shalt.err (!%p270_p0)
}
 0x104   :  { %156 = dma.vmem_to_hbm [thread:$0]  %s151_s25, 256, %s337_s3, [#allocation4], %s289_s15, %s289_s15, %s290_s16  }
 0x105   :  { %286 = dma.done.wait [#allocation4], 256  }
 0x106   :  { %287 = vsyncadd [#allocation4], 4294967040 }
 0x107   :  { %160 = vsyncpa [#allocation3], 1 }
 0x108   :  { %161 = vsyncpa [#allocation6], 1 }
 0x109   :  { %162 = vsyncpa [#allocation4], 1 }

</bundles_post_ra>
